<compile_context>
chip_gen: v6e
topology: v6e:2x2x1
jax: 0.10.0
libtpu: 0.0.40
codegen_flags: <defaults>
</compile_context>

<pallas_src>
import jax
import jax.numpy as jnp
from jax.experimental import pallas as pl
from jax.experimental.pallas import tpu as pltpu

_LANE = 128                       # vreg lane width: a lane-tile width must be a multiple of this
_VMEM_PIPELINE_BUDGET = 40 << 20  # budget for double-buffered in+out tiles (headroom under v7x's 64 MiB)
_VMEM_LIMIT_CAP = 48 << 20        # don't raise scoped VMEM past this (v7x-safe; fine on v5e/v6e too)


def _round_up(x, m):
    return ((x + m - 1) // m) * m


def stable_softmax_kernel(x_ref, o_ref):
    """Stable softmax over dim 0 of one (N, TD) lane-dense tile."""
    x = x_ref[...]                                  # (N, TD) f32 in VMEM
    c = jnp.max(x, axis=0, keepdims=True)           # column-wise max   (XLU)
    e = jnp.exp(x - c)                              # stable exp        (EUP)
    total = jnp.sum(e, axis=0, keepdims=True)       # column-wise sum   (XLU)
    # Exact divide (not approx reciprocal): fully hidden under the HBM DMA in this
    # memory-bound kernel, and keeps bit-level parity with the torch / jax.nn.softmax reference
    # (the approx=True EUP reciprocal was the source of the previous accuracy failure).
    o_ref[...] = e / total


def stable_softmax(x, *, td_target=512):
    """Softmax over axis 0 of a 2-D f32 array (torch-style max-subtracted softmax)."""
    assert x.ndim == 2, "stable_softmax expects a 2-D (N, D) array"
    n, d = x.shape

    # --- lane-tile (TD) selection --------------------------------------------------------
    # Per grid step the pipeline holds input + output tiles, each double-buffered:
    # ~ 2 arrays * 2 buffers * n * td * 4 B = 16 * n * td bytes. Size td against that budget.
    if d <= _LANE:
        td = d                                    # single block == full array dims (no padding at all)
    else:
        budget_td = (_VMEM_PIPELINE_BUDGET // (16 * n)) // _LANE * _LANE
        td = min(td_target, max(_LANE, budget_td), _round_up(d, _LANE))
        # v7x megacore: make sure the parallel D axis has >= 2 grid steps whenever D allows it,
        # so both TensorCores get work (neutral on single-TC v5e/v6e).
        if d >= 2 * _LANE:
            td = min(td, _round_up(pl.cdiv(d, 2), _LANE))
    # TODO(synk): if 16*n*td exceeds VMEM even at td=128 (N in the several tens of thousands),
    # switch to the online-softmax accumulator pattern (grid axis over N marked "arbitrary",
    # running column max / sum / rescaled accumulator in VMEM scratch, pl.when init/finalize).

    grid = (pl.cdiv(d, td),)

    pipeline_bytes = 16 * n * td
    vmem_limit = min(max(2 * pipeline_bytes, 32 << 20), _VMEM_LIMIT_CAP)
    vmem_limit = max(vmem_limit, pipeline_bytes + pipeline_bytes // 4)

    return pl.pallas_call(
        stable_softmax_kernel,
        out_shape=jax.ShapeDtypeStruct((n, d), x.dtype),
        grid=grid,
        # Full reduction axis stays in-block; only the lane (D) axis is tiled, so no
        # cross-block accumulator is needed and the auto-pipeliner double-buffers the DMA.
        in_specs=[pl.BlockSpec((n, td), lambda j: (0, j))],
        out_specs=pl.BlockSpec((n, td), lambda j: (0, j)),
        compiler_params=pltpu.CompilerParams(
            # Columns are independent -> lane-axis grid is parallel (2x on v7x megacore,
            # neutral on single-TC v5e/v6e). Keep math in f32 (v5e has no bf16 VPU/EUP).
            dimension_semantics=("parallel",),
            vmem_limit_bytes=int(vmem_limit),
        ),
        # Advisory hint: this is a memory-bound op (1 read + 1 write of f32, one exp per element).
        cost_estimate=pl.CostEstimate(
            flops=4 * n * d,
            transcendentals=n * d,
            bytes_accessed=8 * n * d,
        ),
    )(x)


if __name__ == "__main__":
    key = jax.random.PRNGKey(0)
    # seq=8, hidden=32 — softmax is taken over the seq (dim 0) axis.
    # (At this toy size a fused jax.nn.softmax would beat any kernel; the Pallas path is
    #  written for realistic lane-dense sizes and merely validated here.)
    x = jax.random.normal(key, (8, 32), dtype=jnp.float32)

    out = jax.block_until_ready(stable_softmax(x))

    # sanity check against the pure-JAX reference (same math: exp(x - max) / sum)
    ref = jax.nn.softmax(x, axis=0)
    assert out.shape == x.shape and out.dtype == x.dtype
    assert jnp.allclose(out, ref, atol=1e-5, rtol=1e-5)
    assert jnp.allclose(out.sum(axis=0), jnp.ones((x.shape[1],), jnp.float32), atol=1e-5)

    print("KERNEL_OK")
</pallas_src>

<mosaic_0001>
module attributes {stable_mosaic.version = 11 : i64} {
  func.func @stable_softmax_kernel(%arg0: i32, %arg1: memref<8x32xf32, #tpu.memory_space<vmem>>, %arg2: memref<8x32xf32, #tpu.memory_space<vmem>>) attributes {dimension_semantics = [#tpu.dimension_semantics<parallel>], iteration_bounds = array<i64: 1>, scalar_prefetch = 0 : i64, scratch_operands = 0 : i64, tpu.core_type = #tpu.core_type<tc>, window_params = [{transform_indices = @transform_0, window_bounds = array<i64: 8, 32>}, {transform_indices = @transform_1, window_bounds = array<i64: 8, 32>}]} {
    %c0 = arith.constant 0 : index
    %c0_0 = arith.constant 0 : index
    %0 = vector.load %arg1[%c0, %c0_0] : memref<8x32xf32, #tpu.memory_space<vmem>>, vector<8x32xf32>
    %cst = arith.constant dense<0xFF800000> : vector<32xf32>
    %1 = vector.multi_reduction <maximumf>, %0, %cst [0] : vector<8x32xf32> to vector<32xf32>
    %2 = vector.shape_cast %1 : vector<32xf32> to vector<1x32xf32>
    %3 = vector.broadcast %2 : vector<1x32xf32> to vector<8x32xf32>
    %4 = arith.subf %0, %3 : vector<8x32xf32>
    %5 = math.exp %4 : vector<8x32xf32>
    %cst_1 = arith.constant dense<0.000000e+00> : vector<32xf32>
    %6 = vector.multi_reduction <add>, %5, %cst_1 [0] : vector<8x32xf32> to vector<32xf32>
    %7 = vector.shape_cast %6 : vector<32xf32> to vector<1x32xf32>
    %8 = vector.broadcast %7 : vector<1x32xf32> to vector<8x32xf32>
    %9 = arith.divf %5, %8 : vector<8x32xf32>
    %c0_2 = arith.constant 0 : index
    %c0_3 = arith.constant 0 : index
    %10 = vector.load %arg2[%c0_2, %c0_3] : memref<8x32xf32, #tpu.memory_space<vmem>>, vector<8x32xf32>
    tpu.vector_store %arg2[%c0_2, %c0_3], %9 {strides = array<i32>} : memref<8x32xf32, #tpu.memory_space<vmem>>, vector<8x32xf32>,
    return
  }
  func.func @transform_0(%arg0: i32) -> (i32, i32) {
    %c0_i32 = arith.constant 0 : i32
    %c0_i32_0 = arith.constant 0 : i32
    return %c0_i32, %arg0 : i32, i32
  }
  func.func @transform_1(%arg0: i32) -> (i32, i32) {
    %c0_i32 = arith.constant 0 : i32
    %c0_i32_0 = arith.constant 0 : i32
    return %c0_i32, %arg0 : i32, i32
  }
}

</mosaic_0001>

<bundles_post_ra>
// kernel: tpu_custom_call.1
= control target key start
LH: loop header
LB: loop body
LE: loop exit
PB: predicated region body
PF: predicated region fallthrough
CT: control target
= control target key end

     0   :  { %6 = vsyncpa [#allocation3], 0  ;;  %s129_s0 = inlined_call_operand.hbm [shape: f32[8,32], index: 0, kind: input, shape index: {}]   ;;  %s130_s1 = inlined_call_operand.hbm [shape: f32[8,32], index: 1, kind: output, shape index: {}]  }
   0x1   :  { %7 = vsyncpa [#allocation4], 0  ;;  %s108_s6 = smov [#allocation2]  }
   0x2   :  { %s14_s7 = sshll.u32 %s108_s6, 4  ;;  %s15_s7 = int_to_ptr.vmem [resolvable:$true] %s14_s7 }
   0x3   :  { %s72_s8 = scalar_lea.vmem %s15_s7, 128  ;;  %p77_p1 = scmp.lt.s32.totalorder %s15_s7, %s15_s7 }
   0x4   :  { %p73_p0 = scmp.ne.s32.totalorder %s15_s7, %s72_s8  ;;  %p78_p2 = scmp.lt.s32.totalorder %s72_s8, %s72_s8 }
   0x6   :  { %p79_p3 = por %p78_p2, %p77_p1 }
   0x8   :  { %p80_p4 = pnand %p79_p3, %p73_p0 }
   0xa   :  { %83 = shalt.err (!%p80_p4)
}
   0xb   :  { %17 = dma.hbm_to_vmem [thread:$0]  %s129_s0, 128, %s15_s7, [#allocation3]  }
   0xc   :  { %104 = dma.done.wait [#allocation3], 128  }
   0xd   :  { %105 = vsyncadd [#allocation3], 4294967168  ;;  %vm22_vm0 = vcmask 261120   ;;  %v21_v0 = vld [vmem:[#allocation2] sm:$0xff]  ;;  %s109_s0 = smov [#allocation5]  }
   0xe   :  { %v23_v1 = vsel %vm22_vm0, %v21_v0, -inf  ;;  %s49_s11 = sshll.u32 %s109_s0, 4  ;;  %s50_s11 = int_to_ptr.vmem [resolvable:$true] %s49_s11 }
   0xf   :  { %v24_v2 = vrot.slane %v23_v1, 4  ;;  %s84_s12 = scalar_lea.vmem %s50_s11, 128  ;;  %p89_p6 = scmp.lt.s32.totalorder %s50_s11, %s50_s11 }
  0x10   :  { %p85_p5 = scmp.ne.s32.totalorder %s50_s11, %s84_s12  ;;  %p90_p7 = scmp.lt.s32.totalorder %s84_s12, %s84_s12 }
  0x11   :  { %v25_v3 = vmax.f32 %v23_v1, %v24_v2 }
  0x12   :  { %p91_p8 = por %p90_p7, %p89_p6 }
  0x13   :  { %v26_v4 = vrot.slane %v25_v3, 2 }
  0x14   :  { %p92_p9 = pnand %p91_p8, %p85_p5 }
  0x15   :  { %v27_v5 = vmax.f32 %v25_v3, %v26_v4 }
  0x17   :  { %v28_v6 = vrot.slane %v27_v5, 1 }
  0x19   :  { %v29_v7 = vmax.f32 %v27_v5, %v28_v6 }
  0x1b   :  { %v30_v8 = vsub.f32 %v21_v0, %v29_v7 }
  0x1d   :  { %v31_v9 = vmul.f32 1.442695, %v30_v8 }
  0x1f   :  { %60 = vpow2.f32 %v31_v9 }
  0x2c   :  { %v61_v10 = vpop.eup %60 }
  0x2d   :  { %v33_v11 = vsel %vm22_vm0, %v61_v10, 0.0 }
  0x2e   :  { %v34_v12 = vrot.slane %v33_v11, 4 }
  0x30   :  { %v35_v13 = vadd.f32 %v34_v12, %v33_v11 }
  0x32   :  { %v36_v14 = vrot.slane %v35_v13, 2 }
  0x34   :  { %v37_v15 = vadd.f32 %v36_v14, %v35_v13 }
  0x36   :  { %v38_v16 = vrot.slane %v37_v15, 1 }
  0x38   :  { %v39_v17 = vadd.f32 %v38_v16, %v37_v15 }
  0x3a   :  { %62 = vrcp.f32 %v39_v17 }
  0x47   :  { %v63_v18 = vpop.eup %62 }
  0x48   :  { %v41_v19 = vmul.f32 %v63_v18, %v61_v10 }
  0x4a   :  { %42 = vst.msk [vmem:[#allocation5] sm:$0xff] %vm22_vm0, %v41_v19 }
  0x4b   :  { %95 = shalt.err (!%p92_p9)
}
  0x4c   :  { %52 = dma.vmem_to_hbm [thread:$0]  %s50_s11, 128, %s130_s1, [#allocation4]  }
  0x4d   :  { %106 = dma.done.wait [#allocation4], 128  }
  0x4e   :  { %107 = vsyncadd [#allocation4], 4294967168 }
  0x4f   :  { %56 = vsyncpa [#allocation3], 1 }
  0x50   :  { %57 = vsyncpa [#allocation4], 1 }

</bundles_post_ra>
